<compile_context>
chip_gen: v7x
topology: tpu7x:2x2x1
jax: 0.10.0
libtpu: 0.0.40
codegen_flags: <defaults>
</compile_context>

<pallas_src>
import functools

import jax
import jax.numpy as jnp
from jax.experimental import pallas as pl
from jax.experimental.pallas import tpu as pltpu

LANE = 128   # lane width of the packed output slab / packed layer-2 weight
TB = 8       # batch tile (full f32 sublane count)


def _actor_critic_kernel(num_action, x_ref, w1_ref, b1_ref, w2_ref, b2_ref, out_ref):
    x = x_ref[...]                                                     # (TB, num_input)

    # Fused layer 1: [critic_h | actor_h] = relu(x @ [cw1|aw1] + [cb1|ab1])
    h = jnp.dot(x, w1_ref[...], preferred_element_type=jnp.float32) + b1_ref[...]
    h = jnp.maximum(h, 0.0)                                            # (TB, 2*hidden)

    # Fused layer 2 (block-diagonal weights): lane 0 = value, lanes 1..A = logits.
    z = jnp.dot(h, w2_ref[...], preferred_element_type=jnp.float32) + b2_ref[...]  # (TB, LANE)

    # Stable softmax over the logit lanes only (mask value lane + padding lanes).
    lane = jax.lax.broadcasted_iota(jnp.int32, z.shape, dimension=1)
    is_logit = (lane >= 1) & (lane <= num_action)
    masked = jnp.where(is_logit, z, -jnp.inf)
    m = jnp.max(masked, axis=-1, keepdims=True)
    e = jnp.exp(masked - m)                                            # 0 on masked lanes
    policy = e * pl.reciprocal(jnp.sum(e, axis=-1, keepdims=True))     # exact reciprocal

    # One lane-dense store: lane 0 carries the raw value, lanes 1..A the policy.
    out_ref[...] = jnp.where(lane == 0, z, policy)


def actor_critic_forward(state, packed, num_action):
    """state: (B, num_input) f32. packed: dict from pack_params. Returns (value, policy)."""
    B, num_input = state.shape
    B_pad = ((B + TB - 1) // TB) * TB
    if B_pad != B:
        state = jnp.pad(state, ((0, B_pad - B), (0, 0)))

    w1, b1, w2, b2 = packed["w1"], packed["b1"], packed["w2"], packed["b2"]
    h2 = w1.shape[1]                                                   # 2 * hidden

    out = pl.pallas_call(
        functools.partial(_actor_critic_kernel, num_action),
        out_shape=jax.ShapeDtypeStruct((B_pad, LANE), jnp.float32),
        grid=(B_pad // TB,),
        in_specs=[
            pl.BlockSpec((TB, num_input), lambda i: (i, 0)),           # state tile
            pl.BlockSpec((num_input, h2), lambda i: (0, 0)),           # packed W1 (resident)
            pl.BlockSpec((1, h2), lambda i: (0, 0)),                   # packed b1 (resident)
            pl.BlockSpec((h2, LANE), lambda i: (0, 0)),                # packed W2 (resident)
            pl.BlockSpec((1, LANE), lambda i: (0, 0)),                 # packed b2 (resident)
        ],
        out_specs=pl.BlockSpec((TB, LANE), lambda i: (i, 0)),
        compiler_params=pltpu.CompilerParams(
            dimension_semantics=("parallel",)),                        # v7x: shard batch over 2 TCs
    )(state, w1, b1, w2, b2)

    value = out[:B, 0:1]
    policy = out[:B, 1:1 + num_action]
    return value, policy


def init_params(key, num_input, num_action, hidden_size):
    """PyTorch-Linear-style init (uniform +-1/sqrt(fan_in)); weights stored (in, out)."""
    ks = jax.random.split(key, 8)

    def lin(kw, kb, fan_in, fan_out):
        bound = 1.0 / jnp.sqrt(jnp.float32(fan_in))
        w = jax.random.uniform(kw, (fan_in, fan_out), jnp.float32, -bound, bound)
        b = jax.random.uniform(kb, (1, fan_out), jnp.float32, -bound, bound)
        return w, b

    cw1, cb1 = lin(ks[0], ks[1], num_input, hidden_size)
    cw2, cb2 = lin(ks[2], ks[3], hidden_size, 1)
    aw1, ab1 = lin(ks[4], ks[5], num_input, hidden_size)
    aw2, ab2 = lin(ks[6], ks[7], hidden_size, num_action)
    return dict(cw1=cw1, cb1=cb1, cw2=cw2, cb2=cb2,
                aw1=aw1, ab1=ab1, aw2=aw2, ab2=ab2)


def pack_params(p, num_action):
    """One-time JAX-side packing of the two heads into a fused 2-matmul chain."""
    num_input, hidden = p["cw1"].shape
    h2 = 2 * hidden

    # Layer 1: concatenate critic|actor along the output axis.
    w1 = jnp.concatenate([p["cw1"], p["aw1"]], axis=1)                 # (num_input, 2H)
    b1 = jnp.concatenate([p["cb1"], p["ab1"]], axis=1)                 # (1, 2H)

    # Layer 2: block-diagonal, padded to a 128-lane output slab.
    w2 = jnp.zeros((h2, LANE), jnp.float32)
    w2 = w2.at[:hidden, 0:1].set(p["cw2"])                             # critic -> lane 0
    w2 = w2.at[hidden:, 1:1 + num_action].set(p["aw2"])                # actor  -> lanes 1..A
    b2 = jnp.zeros((1, LANE), jnp.float32)
    b2 = b2.at[:, 0:1].set(p["cb2"])
    b2 = b2.at[:, 1:1 + num_action].set(p["ab2"])
    return dict(w1=w1, b1=b1, w2=w2, b2=b2)


def reference_forward(state, p):
    """Pure-JAX reference mirroring the PyTorch forward (unpacked weights)."""
    h_c = jnp.maximum(state @ p["cw1"] + p["cb1"], 0.0)
    value = h_c @ p["cw2"] + p["cb2"]
    h_a = jnp.maximum(state @ p["aw1"] + p["ab1"], 0.0)
    logits = h_a @ p["aw2"] + p["ab2"]
    policy = jax.nn.softmax(logits, axis=1)
    return value, policy


if __name__ == "__main__":
    num_input, num_action, hidden = 16, 8, 64   # hidden_size = 64 per the module spec
    batch = 16                                  # batched rollout states (multiple of 8)

    key = jax.random.PRNGKey(0)
    k_state, k_params = jax.random.split(key)
    states = jax.random.normal(k_state, (batch, num_input), jnp.float32)
    params = init_params(k_params, num_input, num_action, hidden)
    packed = pack_params(params, num_action)

    # Batched path (grid over batch tiles, resident weights).
    value, policy = actor_critic_forward(states, packed, num_action)
    jax.block_until_ready((value, policy))

    v_ref, p_ref = reference_forward(states, params)
    assert value.shape == (batch, 1) and policy.shape == (batch, num_action)
    assert jnp.allclose(value, v_ref, atol=1e-5, rtol=1e-5)
    assert jnp.allclose(policy, p_ref, atol=1e-5, rtol=1e-5)
    assert jnp.allclose(jnp.sum(policy, axis=1), 1.0, atol=1e-5)

    # Single-state path (matches the PyTorch forward's unsqueeze(0)); wrapper pads B->8.
    v1, p1 = actor_critic_forward(states[:1], packed, num_action)
    jax.block_until_ready((v1, p1))
    assert v1.shape == (1, 1) and p1.shape == (1, num_action)
    assert jnp.allclose(v1, v_ref[:1], atol=1e-5, rtol=1e-5)
    assert jnp.allclose(p1, p_ref[:1], atol=1e-5, rtol=1e-5)

    print("KERNEL_OK")
</pallas_src>

<mosaic_0001>
module attributes {stable_mosaic.version = 11 : i64} {
  func.func @_actor_critic_kernel(%arg0: i32, %arg1: memref<8x16xf32, #tpu.memory_space<vmem>>, %arg2: memref<16x128xf32, #tpu.memory_space<vmem>>, %arg3: memref<1x128xf32, #tpu.memory_space<vmem>>, %arg4: memref<128x128xf32, #tpu.memory_space<vmem>>, %arg5: memref<1x128xf32, #tpu.memory_space<vmem>>, %arg6: memref<8x128xf32, #tpu.memory_space<vmem>>) attributes {dimension_semantics = [#tpu.dimension_semantics<parallel>], iteration_bounds = array<i64: 2>, scalar_prefetch = 0 : i64, scratch_operands = 0 : i64, tpu.core_type = #tpu.core_type<tc>, window_params = [{transform_indices = @transform_0, window_bounds = array<i64: 8, 16>}, {pipeline_mode = #tpu.pipeline_mode<synchronous>, transform_indices = @transform_1, window_bounds = array<i64: 16, 128>}, {pipeline_mode = #tpu.pipeline_mode<synchronous>, transform_indices = @transform_2, window_bounds = array<i64: 1, 128>}, {pipeline_mode = #tpu.pipeline_mode<synchronous>, transform_indices = @transform_3, window_bounds = array<i64: 128, 128>}, {pipeline_mode = #tpu.pipeline_mode<synchronous>, transform_indices = @transform_4, window_bounds = array<i64: 1, 128>}, {transform_indices = @transform_5, window_bounds = array<i64: 8, 128>}]} {
    %c0 = arith.constant 0 : index
    %c0_0 = arith.constant 0 : index
    %0 = vector.load %arg1[%c0, %c0_0] : memref<8x16xf32, #tpu.memory_space<vmem>>, vector<8x16xf32>
    %c0_1 = arith.constant 0 : index
    %c0_2 = arith.constant 0 : index
    %1 = vector.load %arg2[%c0_1, %c0_2] : memref<16x128xf32, #tpu.memory_space<vmem>>, vector<16x128xf32>
    %cst = arith.constant dense<0.000000e+00> : vector<8x128xf32>
    %2 = tpu.matmul %0, %1, %cst {dimension_numbers = #tpu.dot_dimension_numbers<[1], [0], [0], [1], [0, 0, 1, 1], [], []>} : vector<8x16xf32>, vector<16x128xf32>, vector<8x128xf32> -> vector<8x128xf32>
    %c0_3 = arith.constant 0 : index
    %c0_4 = arith.constant 0 : index
    %3 = vector.load %arg3[%c0_3, %c0_4] : memref<1x128xf32, #tpu.memory_space<vmem>>, vector<1x128xf32>
    %4 = vector.broadcast %3 : vector<1x128xf32> to vector<8x128xf32>
    %5 = arith.addf %2, %4 : vector<8x128xf32>
    %cst_5 = arith.constant 0.000000e+00 : f32
    %6 = vector.broadcast %cst_5 : f32 to vector<8x128xf32>
    %7 = arith.maximumf %5, %6 : vector<8x128xf32>
    %c0_6 = arith.constant 0 : index
    %c0_7 = arith.constant 0 : index
    %8 = vector.load %arg4[%c0_6, %c0_7] : memref<128x128xf32, #tpu.memory_space<vmem>>, vector<128x128xf32>
    %cst_8 = arith.constant dense<0.000000e+00> : vector<8x128xf32>
    %9 = tpu.matmul %7, %8, %cst_8 {dimension_numbers = #tpu.dot_dimension_numbers<[1], [0], [0], [1], [0, 0, 1, 1], [], []>} : vector<8x128xf32>, vector<128x128xf32>, vector<8x128xf32> -> vector<8x128xf32>
    %c0_9 = arith.constant 0 : index
    %c0_10 = arith.constant 0 : index
    %10 = vector.load %arg5[%c0_9, %c0_10] : memref<1x128xf32, #tpu.memory_space<vmem>>, vector<1x128xf32>
    %11 = vector.broadcast %10 : vector<1x128xf32> to vector<8x128xf32>
    %12 = arith.addf %9, %11 : vector<8x128xf32>
    %13 = tpu.iota {dimensions = array<i32: 1>} : vector<8x128xi32>
    %c1_i32 = arith.constant 1 : i32
    %14 = vector.broadcast %c1_i32 : i32 to vector<8x128xi32>
    %15 = arith.cmpi sge, %13, %14 : vector<8x128xi32>
    %c8_i32 = arith.constant 8 : i32
    %16 = vector.broadcast %c8_i32 : i32 to vector<8x128xi32>
    %17 = arith.cmpi sle, %13, %16 : vector<8x128xi32>
    %18 = arith.andi %15, %17 : vector<8x128xi1>
    %cst_11 = arith.constant 0xFF800000 : f32
    %19 = vector.broadcast %cst_11 : f32 to vector<8x128xf32>
    %20 = arith.select %18, %12, %19 : vector<8x128xi1>, vector<8x128xf32>
    %cst_12 = arith.constant dense<0xFF800000> : vector<8xf32>
    %21 = vector.multi_reduction <maximumf>, %20, %cst_12 [1] : vector<8x128xf32> to vector<8xf32>
    %22 = vector.shape_cast %21 : vector<8xf32> to vector<8x1xf32>
    %23 = vector.broadcast %22 : vector<8x1xf32> to vector<8x128xf32>
    %24 = arith.subf %20, %23 : vector<8x128xf32>
    %25 = math.exp %24 : vector<8x128xf32>
    %cst_13 = arith.constant dense<0.000000e+00> : vector<8xf32>
    %26 = vector.multi_reduction <add>, %25, %cst_13 [1] : vector<8x128xf32> to vector<8xf32>
    %27 = vector.shape_cast %26 : vector<8xf32> to vector<8x1xf32>
    %28 = tpu.reciprocal %27 : vector<8x1xf32> -> vector<8x1xf32>
    %29 = vector.broadcast %28 : vector<8x1xf32> to vector<8x128xf32>
    %30 = arith.mulf %25, %29 : vector<8x128xf32>
    %c0_i32 = arith.constant 0 : i32
    %31 = vector.broadcast %c0_i32 : i32 to vector<8x128xi32>
    %32 = arith.cmpi eq, %13, %31 : vector<8x128xi32>
    %33 = arith.select %32, %12, %30 : vector<8x128xi1>, vector<8x128xf32>
    %c0_14 = arith.constant 0 : index
    %c0_15 = arith.constant 0 : index
    %34 = vector.load %arg6[%c0_14, %c0_15] : memref<8x128xf32, #tpu.memory_space<vmem>>, vector<8x128xf32>
    tpu.vector_store %arg6[%c0_14, %c0_15], %33 {strides = array<i32>} : memref<8x128xf32, #tpu.memory_space<vmem>>, vector<8x128xf32>,
    return
  }
  func.func @transform_0(%arg0: i32) -> (i32, i32) {
    %c0_i32 = arith.constant 0 : i32
    %c0_i32_0 = arith.constant 0 : i32
    return %arg0, %c0_i32 : i32, i32
  }
  func.func @transform_1(%arg0: i32) -> (i32, i32) {
    %c0_i32 = arith.constant 0 : i32
    %c0_i32_0 = arith.constant 0 : i32
    %c0_i32_1 = arith.constant 0 : i32
    return %c0_i32, %c0_i32_0 : i32, i32
  }
  func.func @transform_2(%arg0: i32) -> (i32, i32) {
    %c0_i32 = arith.constant 0 : i32
    %c0_i32_0 = arith.constant 0 : i32
    %c0_i32_1 = arith.constant 0 : i32
    return %c0_i32, %c0_i32_0 : i32, i32
  }
  func.func @transform_3(%arg0: i32) -> (i32, i32) {
    %c0_i32 = arith.constant 0 : i32
    %c0_i32_0 = arith.constant 0 : i32
    %c0_i32_1 = arith.constant 0 : i32
    return %c0_i32, %c0_i32_0 : i32, i32
  }
  func.func @transform_4(%arg0: i32) -> (i32, i32) {
    %c0_i32 = arith.constant 0 : i32
    %c0_i32_0 = arith.constant 0 : i32
    %c0_i32_1 = arith.constant 0 : i32
    return %c0_i32, %c0_i32_0 : i32, i32
  }
  func.func @transform_5(%arg0: i32) -> (i32, i32) {
    %c0_i32 = arith.constant 0 : i32
    %c0_i32_0 = arith.constant 0 : i32
    return %arg0, %c0_i32 : i32, i32
  }
}

</mosaic_0001>

<bundles_post_ra>
// kernel: tpu_custom_call.1
= control target key start
LH: loop header
LB: loop body
LE: loop exit
PB: predicated region body
PF: predicated region fallthrough
CT: control target
= control target key end

     0   :  { %10 = vsyncpa [#allocation3], 0  ;;  %s1188_s0 = inlined_call_operand.hbm [shape: f32[16,16], index: 0, kind: input, shape index: {}]   ;;  %s1189_s1 = inlined_call_operand.hbm [shape: f32[16,128], index: 1, kind: input, shape index: {}]   ;;  %s1190_s2 = inlined_call_operand.vmem [shape: f32[1,128], index: 2, kind: input, shape index: {}]   ;;  %s1191_s3 = inlined_call_operand.hbm [shape: f32[128,128], index: 3, kind: input, shape index: {}]   ;;  %s1192_s4 = inlined_call_operand.vmem [shape: f32[1,128], index: 4, kind: input, shape index: {}]   ;;  %s1193_s5 = inlined_call_operand.hbm [shape: f32[16,128], index: 5, kind: output, shape index: {}]  }
   0x1   :  { %12 = vsyncpa [#allocation3 + $0x1], 0 }
   0x2   :  { %13 = vsyncpa [#allocation6], 0 }
   0x3   :  { %14 = vsyncpa [#allocation4], 0 }
   0x4   :  { %16 = vsyncpa [#allocation4 + $0x1], 0  ;;  %s949_s18 = smov 0   ;;  %s951_s19 = smov 0  }
   0x5   :  { %s953_s20 = smov 0   ;;  %s955_s21 = smov 0  }
   0x6 LB: > { %s970_s22 = sadd.s32 4294967295, %s908_s21   ;;  %s568_s23 = sadd.s32 4294967294, %s908_s21   ;;  %s908_s21 = sphi %s955_s21, %s1213_s21   ;;  %s904_s20 = sphi %s953_s20, %s1212_s20   ;;  %s900_s19 = sphi %s951_s19, %s1211_s19   ;;  %s896_s18 = sphi %s949_s18, %s1210_s18  }
   0x7   : > { %p42_p0 = scmp.ne.s32.totalorder %s900_s19, %s896_s18  ;;  %p1194_p1 = scmp.eq.s32.totalorder %s970_s22, 0 }
   0x8   : > { %p156_p3 = scmp.eq.s32.totalorder %s568_s23, 1  ;;  %p569_p5 = scmp.ge.s32.totalorder %s908_s21, 1 }
   0x9   : > { %p979_p4 = por %p1194_p1, %p42_p0  ;;  %p163_p7 = scmp.lt.s32.totalorder %s908_s21, 3 }
   0xa   : > { %p984_p6 = por %p156_p3, %p42_p0  ;;  %s910_s27 = smov [#allocation5]  }
   0xb   : > { %s1197_s24 = scalar_select %p979_p4, 1, 0 }
   0xc   : > { %s1198_s25 = scalar_select %p984_p6, 1, 0 }
   0xd   : > { %p989_p8 = pnand %p569_p5, %p163_p7  ;;  %s175_s28 = sshll.u32 %s910_s27, 4  ;;  %s993_s28 = int_to_ptr.vmem [resolvable:$true] %s175_s28 }
   0xe   : > { %s911_s30 = smov [#allocation7]   ;;  %s752_s9 = scalar_lea.hbm %s1189_s1, 256 }
   0xf   : > { %p688_p9 = pneg %p989_p8  ;;  %s191_s6 = sshll.u32 %s911_s30, 4  ;;  %s1004_s6 = int_to_ptr.vmem [resolvable:$true] %s191_s6 }
  0x10   : > { %p753_p12 = scmp.ne.s32.totalorder %s1189_s1, %s752_s9  ;;  %p759_p5 = scmp.lt.u32.totalorder %s752_s9, %s1189_s1 }
  0x11   : > { %p1000_p11 = pnand %p688_p9, %p1194_p1 }
  0x13   : > { %p754_p13 = pneg %p1000_p11 }
  0x15   : > { %p755_p0 = pnand %p754_p13, %p753_p12 }
  0x17   : > { %p756_p3 = pneg %p755_p0 }
  0x19   : > { %p761_p7 = pnand %p759_p5, %p756_p3 }
  0x1b   : > { %764 = shalt.err (!%p761_p7)
}
  0x1c   : > { %s765_s14 = scalar_lea.vmem %s993_s28, 256  ;;  %p773_p2 = scmp.lt.s32.totalorder %s993_s28, %s993_s28 }
  0x1d   : > { %p766_p9 = scmp.ne.s32.totalorder %s993_s28, %s765_s14  ;;  %p774_p12 = scmp.lt.s32.totalorder %s765_s14, %s765_s14 }
  0x1f   : > { %p768_p10 = pnand %p766_p9, %p754_p13  ;;  %p775_p0 = por %p774_p12, %p773_p2 }
  0x21   : > { %p769_p1 = pneg %p768_p10 }
  0x23   : > { %p776_p6 = pnand %p775_p0, %p769_p1 }
  0x25   : > { %779 = shalt.err (!%p776_p6)
}
  0x26   : > { %s912_s15 = smov 128   ;;  %s913_s16 = smov 8  }
  0x27   : > { %691 = dma.hbm_to_vmem [thread:$0]  (!%p1000_p11), %s1189_s1, 256, %s993_s28, [#allocation6], %s912_s15, %s912_s15, %s913_s16  }
  0x28   : > { %s780_s7 = scalar_lea.hbm %s1191_s3, 2048 }
  0x29   : > { %p781_p2 = scmp.ne.s32.totalorder %s1191_s3, %s780_s7  ;;  %p787_p10 = scmp.lt.u32.totalorder %s780_s7, %s1191_s3 }
  0x2b   : > { %p783_p1 = pnand %p781_p2, %p754_p13 }
  0x2d   : > { %p784_p6 = pneg %p783_p1 }
  0x2f   : > { %p789_p3 = pnand %p787_p10, %p784_p6 }
  0x31   : > { %792 = shalt.err (!%p789_p3)
}
  0x32   : > { %s793_s28 = scalar_lea.vmem %s1004_s6, 2048  ;;  %p801_p12 = scmp.lt.s32.totalorder %s1004_s6, %s1004_s6 }
  0x33   : > { %p794_p5 = scmp.ne.s32.totalorder %s1004_s6, %s793_s28  ;;  %p802_p0 = scmp.lt.s32.totalorder %s793_s28, %s793_s28 }
  0x35   : > { %p796_p7 = pnand %p794_p5, %p754_p13  ;;  %p803_p2 = por %p802_p0, %p801_p12 }
  0x37   : > { %p797_p9 = pneg %p796_p7 }
  0x39   : > { %p804_p1 = pnand %p803_p2, %p797_p9 }
  0x3b   : > { %807 = shalt.err (!%p804_p1)
}
  0x3c   : > { %694 = dma.hbm_to_vmem [thread:$0]  (!%p1000_p11), %s1191_s3, 2048, %s1004_s6, [#allocation6], %s912_s15, %s912_s15, %s913_s16  }
  0x3d   : > { %s1059_s14 = sadd.s32 1, %s908_s21   ;;  %s29_s29 = sadd.s32 1, %s904_s20 }
  0x3e   : > { %s26_s17 = ssub.s32 %s908_s21, %s1059_s14  ;;  %p36_p13 = scmp.ne.s32.totalorder %s904_s20, %s900_s19 }
  0x3f   : > { %p27_p6 = scmp.eq.s32.totalorder %s26_s17, 0  ;;  %p37_p10 = scmp.eq.s32.totalorder %s908_s21, 0 }
  0x40   : > { %p1201_p3 = scmp.eq.s32.totalorder %s970_s22, 1  ;;  %p705_p7 = scmp.lt.s32.totalorder %s908_s21, 2 }
  0x41   : > { %s1075_s27 = scalar_select %p27_p6, %s904_s20, %s29_s29  }
  0x42   : > { %p1069_p5 = por %p1201_p3, %p36_p13  ;;  %p38_p9 = por %p37_p10, %p36_p13 }
  0x43   : > { %s208_s30 = sand.u32 1, %s904_s20   ;;  %s574_s6 = sshll.u32 %s908_s21, 7 }
  0x44   : > { %s1202_s23 = scalar_select %p1069_p5, 1, 0 }
  0x45   : > { %s573_s7 = sshll.u32 %s208_s30, 3  ;;  %s1082_s8 = scalar_lea.hbm %s1188_s0, %s574_s6 }
  0x46   : > { %s212_s9 = scalar_lea.vmem [#allocation2], %s573_s7  ;;  %p1086_p11 = pnand %p705_p7, %p38_p9 }
  0x47   : > { %s219_s10 = sshll.u32 %s212_s9, 4  ;;  %s209_s28 = scalar_lea.sflag [#allocation3], %s208_s30  ;;  %s1084_s10 = int_to_ptr.vmem [resolvable:$true] %s219_s10 }
  0x48   : > { %s808_s12 = scalar_lea.hbm %s1082_s8, 128  ;;  %p810_p0 = pneg %p1086_p11 }
  0x49   : > { %p809_p12 = scmp.ne.s32.totalorder %s1082_s8, %s808_s12  ;;  %s813_s17 = scalar_lea.hbm %s1188_s0, 256 }
  0x4a   : > { %p814_p13 = scmp.lt.u32.totalorder %s1082_s8, %s1188_s0  ;;  %p815_p6 = scmp.lt.u32.totalorder %s813_s17, %s808_s12 }
  0x4b   : > { %p811_p2 = pnand %p810_p0, %p809_p12  ;;  %p817_p3 = scmp.lt.u32.totalorder %s808_s12, %s1082_s8 }
  0x4c   : > { %p816_p10 = por %p815_p6, %p814_p13 }
  0x4d   : > { %p812_p1 = pneg %p811_p2 }
  0x4e   : > { %p818_p7 = por %p817_p3, %p816_p10 }
  0x50   : > { %p819_p9 = pnand %p818_p7, %p812_p1 }
  0x52   : > { %822 = shalt.err (!%p819_p9)
}
  0x53   : > { %s823_s30 = scalar_lea.vmem %s1084_s10, 128  ;;  %s914_s15 = smov [#allocation2]  }
  0x54   : > { %p824_p12 = scmp.ne.s32.totalorder %s1084_s10, %s823_s30  ;;  %s828_s16 = sshll.u32 %s914_s15, 4  ;;  %s829_s16 = int_to_ptr.vmem [resolvable:$false] %s828_s16 }
  0x55   : > { %s830_s9 = scalar_lea.vmem %s829_s16, 256  ;;  %p831_p4 = scmp.lt.s32.totalorder %s1084_s10, %s829_s16 }
  0x56   : > { %p826_p2 = pnand %p824_p12, %p810_p0  ;;  %p832_p13 = scmp.lt.s32.totalorder %s830_s9, %s823_s30 }
  0x58   : > { %p827_p5 = pneg %p826_p2  ;;  %p833_p6 = por %p832_p13, %p831_p4 }
  0x5a   : > { %p834_p10 = pnand %p833_p6, %p827_p5 }
  0x5c   : > { %837 = shalt.err (!%p834_p10)
}
  0x5d   : > { %698 = dma.hbm_to_vmem [thread:$0]  (!%p1086_p11), %s1082_s8, 128, %s1084_s10, %s209_s28  }
  0x5e   : > { %228 = sbr.rel (%p989_p8) target bundleno = 869 (0x365), region = 40  ;;  %s1118_s12 = sand.u32 (!%p989_p8), 1, %s900_s19  }
  0x5f   : > { %s576_s13 = sshll.u32 (!%p989_p8), %s1118_s12, 3  ;;  %s231_s29 = scalar_lea.sflag (!%p989_p8), [#allocation3], %s1118_s12 }
  0x60   : > { %s234_s17 = scalar_lea.vmem (!%p989_p8), [#allocation2], %s576_s13  ;;  %p1204_p4 = scmp.ne.s32.totalorder (!%p989_p8), %s1197_s24, 0 }
  0x65   : > { %883 = dma.done.wait (%p1204_p4), %s231_s29, 128  }
  0x66   : > { %885 = vsyncadd (%p1204_p4), %s231_s29, 4294967168  ;;  %p1205_p5 = scmp.eq.s32.totalorder %s970_s22, 0 }
  0x68   : > { %887 = dma.done.wait (%p1205_p5), [#allocation6], 2304   ;;  %p1206_p8 = pmov %p1205_p5 }
  0x69   : > { %v915_v0 = vmov 0.0|0.0   ;;  %vm916_vm0 = vmmov 0   ;;  %v917_v1 = vmov 0.0   ;;  %v270_v2 = vld [vmem:[#allocation5] sm:$0xff]  ;;  %v271_v3 = vld [vmem:[#allocation5 + $0x8] sm:$0xff]  ;;  %v354_v5 = vld [vmem:[#allocation7] sm:$0xff]  ;;  %v447_v35 = vlaneseq }
  0x6a   : > { %889 = vsyncadd (%p1206_p8), [#allocation6], 4294964992  ;;  %649 = vmatprep.subr.bf16.mxu0 %v915_v0  ;;  %611 = vmatprep.mubr.msk.f32.mxu0 %vm916_vm0, %v917_v1  ;;  %v650_v4 = vpack.c.bf16 %v271_v3, %v270_v2  ;;  %v355_v6 = vld [vmem:[#allocation7 + $0x8] sm:$0xff]  ;;  %v356_v7 = vld [vmem:[#allocation7 + $0x10] sm:$0xff]  ;;  %vm279_vm1 = vcmask 130048   ;;  %s584_s11 = sshll.u32 %s970_s22, 7 }
  0x6b   : > { %652 = vmatprep.subr.bf16.mxu1 %v915_v0  ;;  %646 = vmatprep.mubr.msk.f32.mxu1 %vm916_vm0, %v917_v1  ;;  %v653_v8 = vpack.c.bf16 %v355_v6, %v354_v5  ;;  %v357_v9 = vld [vmem:[#allocation7 + $0x18] sm:$0xff]  ;;  %v269_v10 = vld [vmem:[%s234_s17] sm:$0xff]  ;;  %v360_v15 = vld [vmem:[#allocation7 + $0x30] sm:$0xff]  ;;  %v448_v36 = vand.u32 127, %v447_v35  ;;  %s268_s28 = scalar_lea.vmem [#allocation8], %s576_s13  ;;  %s1144_s15 = scalar_lea.hbm %s1193_s5, %s584_s11 }
  0x6c   : > { %651 = vmatpush3.bf16.msra.mxu0 %v650_v4  ;;  %v656_v11 = vpack.c.bf16 %v357_v9, %v356_v7  ;;  %v358_v12 = vld [vmem:[#allocation7 + $0x20] sm:$0xff]  ;;  %v359_v13 = vld [vmem:[#allocation7 + $0x28] sm:$0xff]  ;;  %v361_v16 = vld [vmem:[#allocation7 + $0x38] sm:$0xff]  ;;  %s479_s7 = sshll.u32 %s268_s28, 4  ;;  %s466_s16 = scalar_lea.sflag [#allocation4], %s1118_s12  ;;  %s1146_s7 = int_to_ptr.vmem [resolvable:$true] %s479_s7 }
  0x6d   : > { %654 = vmatpush3.bf16.msra.mxu1 %v653_v8  ;;  %v659_v14 = vpack.c.bf16 %v359_v13, %v358_v12  ;;  %v662_v17 = vpack.c.bf16 %v361_v16, %v360_v15  ;;  %v362_v18 = vld [vmem:[#allocation7 + $0x40] sm:$0xff]  ;;  %v363_v19 = vld [vmem:[#allocation7 + $0x48] sm:$0xff]  ;;  %v364_v21 = vld [vmem:[#allocation7 + $0x50] sm:$0xff]  ;;  %vm449_vm2 = vcmp.ge.s32.totalorder %v448_v36, 1  ;;  %vm450_vm3 = vcmp.le.s32.totalorder %v448_v36, 8  ;;  %s838_s22 = scalar_lea.vmem %s1146_s7, 128 }
  0x6e   : > { %655 = vmatprep.subr.bf16.mxu1 %v915_v0  ;;  %v665_v20 = vpack.c.bf16 %v363_v19, %v362_v18  ;;  %v365_v22 = vld [vmem:[#allocation7 + $0x58] sm:$0xff]  ;;  %v366_v24 = vld [vmem:[#allocation7 + $0x60] sm:$0xff]  ;;  %v367_v25 = vld [vmem:[#allocation7 + $0x68] sm:$0xff]  ;;  %vm462_vm5 = vcmp.eq.s32.totalorder %v448_v36, 0  ;;  %p839_p11 = scmp.ne.s32.totalorder %s1146_s7, %s838_s22  ;;  %p1207_p0 = scmp.ne.s32.totalorder %s1202_s23, 0 }
  0x6f   : > { %612 = vmatmul.mubr.msk.f32.vlgmr.msra.gmra.mrb[0].mxu0 %vm279_vm1, %v269_v10  ;;  %v668_v23 = vpack.c.bf16 %v365_v22, %v364_v21  ;;  %v671_v26 = vpack.c.bf16 %v367_v25, %v366_v24  ;;  %v368_v27 = vld [vmem:[#allocation7 + $0x70] sm:$0xff]  ;;  %v369_v28 = vld [vmem:[#allocation7 + $0x78] sm:$0xff]  ;;  %v580_v30 = vld [vmem:[%s1190_s2] ss:$0 sm:$0xff]  ;;  %s918_s9 = smov [#allocation8]  }
  0x70   : > { %v674_v29 = vpack.c.bf16 %v369_v28, %v368_v27  ;;  %v582_v37 = vld [vmem:[%s1192_s4] ss:$0 sm:$0xff]  ;;  %vm451_vm4 = vmand %vm449_vm2, %vm450_vm3  ;;  %p840_p1 = pnand %p839_p11, %p1207_p0  ;;  %s842_s13 = sshll.u32 %s918_s9, 4  ;;  %s843_s13 = int_to_ptr.vmem [resolvable:$false] %s842_s13 }
  0x71   : > { %657 = vmatpush3.bf16.msra.mxu1 %v656_v11  ;;  %s844_s29 = scalar_lea.vmem %s843_s13, 256  ;;  %p845_p7 = scmp.lt.s32.totalorder %s1146_s7, %s843_s13 }
  0x72   : > { %658 = vmatprep.subr.bf16.mxu1 %v915_v0  ;;  %p841_p3 = pneg %p840_p1  ;;  %p846_p9 = scmp.lt.s32.totalorder %s844_s29, %s838_s22 }
  0x74   : > { %p847_p12 = por %p846_p9, %p845_p7 }
  0x75   : > { %660 = vmatpush3.bf16.msra.mxu1 %v659_v14 }
  0x76   : > { %661 = vmatprep.subr.bf16.mxu1 %v915_v0  ;;  %p848_p2 = pnand %p847_p12, %p841_p3 }
  0x79   : > { %663 = vmatpush3.bf16.msra.mxu1 %v662_v17 }
  0x7a   : > { %664 = vmatprep.subr.bf16.mxu1 %v915_v0 }
  0x7d   : > { %666 = vmatpush3.bf16.msra.mxu1 %v665_v20 }
  0x7e   : > { %667 = vmatprep.subr.bf16.mxu1 %v915_v0 }
  0x81   : > { %669 = vmatpush3.bf16.msra.mxu1 %v668_v23 }
  0x82   : > { %670 = vmatprep.subr.bf16.mxu1 %v915_v0 }
  0x85   : > { %672 = vmatpush3.bf16.msra.mxu1 %v671_v26 }
  0x86   : > { %673 = vmatprep.subr.bf16.mxu1 %v915_v0 }
  0x89   : > { %675 = vmatpush3.bf16.msra.mxu1 %v674_v29 }
 0x142   : > { %v349_v31 = vpop.f32.mrb[0].mxu0 }
 0x143   : > { %v350_v32 = vadd.f32 %v580_v30, %v349_v31  ;;  %v613_v33 = vpop.f32.mrb[1].mxu0 }
 0x145   : > { %v353_v34 = vmax.f32 %v350_v32, 0.0 }
 0x147   : > { %647 = vmatmul.mubr.f32.vlgmr.msra.gmra.mrb[0].mxu1 %v353_v34 }
 0x21a   : > { %v443_v38 = vpop.f32.mrb[0].mxu1 }
 0x21b   : > { %v444_v39 = vadd.f32 %v582_v37, %v443_v38  ;;  %v648_v40 = vpop.f32.mrb[1].mxu1 }
 0x21d   : > { %v452_v41 = vsel %vm451_vm4, %v444_v39, -inf }
 0x21e   : > { %453 = vmax.xlane.f32.xlu0 %v452_v41 }
 0x2ab   : > { %v454_v42 = vpop.xlane.xlu0 %453 }
 0x2ac   : > { %v455_v43 = vsub.f32 %v452_v41, %v454_v42 }
 0x2ae   : > { %v456_v44 = vmul.f32 1.442695, %v455_v43 }
 0x2b0   : > { %748 = vpow2.f32 %v456_v44 }
 0x2ba   : > { %v749_v45 = vpop.eup %748 }
 0x2bb   : > { %458 = vadd.xlane.f32.xlu0 %v749_v45 }
 0x348   : > { %v459_v46 = vpop.xlane.xlu0 %458 }
 0x349   : > { %750 = vrcp.f32 %v459_v46 }
 0x353   : > { %v751_v47 = vpop.eup %750 }
 0x354   : > { %v461_v48 = vmul.f32 %v751_v47, %v749_v45 }
 0x356   : > { %v463_v49 = vsel %vm462_vm5, %v444_v39, %v461_v48 }
 0x357   : > { %464 = vst [vmem:[%s268_s28] sm:$0xff] %v463_v49 }
 0x358   : > { %851 = shalt.err (!%p848_p2)
}
 0x359   : > { %s852_s12 = scalar_lea.hbm %s1144_s15, 128  ;;  %s856_s26 = scalar_lea.hbm %s1193_s5, 256 }
 0x35a   : > { %p853_p13 = scmp.ne.s32.totalorder %s1144_s15, %s852_s12  ;;  %p857_p4 = scmp.lt.u32.totalorder %s1144_s15, %s1193_s5 }
 0x35b   : > { %p858_p5 = scmp.lt.u32.totalorder %s856_s26, %s852_s12  ;;  %p860_p11 = scmp.lt.u32.totalorder %s852_s12, %s1144_s15 }
 0x35c   : > { %p854_p6 = pnand %p853_p13, %p1207_p0 }
 0x35d   : > { %p859_p8 = por %p858_p5, %p857_p4 }
 0x35e   : > { %p855_p10 = pneg %p854_p6 }
 0x35f   : > { %p861_p1 = por %p860_p11, %p859_p8 }
 0x361   : > { %p862_p3 = pnand %p861_p1, %p855_p10 }
 0x363   : > { %865 = shalt.err (!%p862_p3)
}
 0x364   : > { %686 = dma.vmem_to_hbm [thread:$0]  (%p1207_p0), %s1146_s7, 128, %s1144_s15, %s466_s16  }
 0x365 PF: > { %s491_s11 = sand.u32 1, %s896_s18   ;;  %p1208_p7 = scmp.ne.s32.totalorder %s1198_s25, 0 }
 0x366   : > { %p1209_p9 = scmp.ge.s32.totalorder %s908_s21, 2  ;;  %s492_s28 = scalar_lea.sflag [#allocation4], %s491_s11 }
 0x368   : > { %p700_p12 = pnand %p1209_p9, %p1208_p7 }
 0x36a   : > { %891 = dma.done.wait (!%p700_p12), %s492_s28, 128  }
 0x36b   : > { %893 = vsyncadd (!%p700_p12), %s492_s28, 4294967168  ;;  %p19_p2 = scmp.ge.s32.totalorder %s1059_s14, 4   ;;  %s1210_s18 = smov %s900_s19 }
 0x36c   : > { %s1211_s19 = smov %s904_s20  ;;  %s1212_s20 = smov %s1075_s27 }
 0x36d   : > { %s1213_s21 = smov %s1059_s14  ;;  %21 = sbr.rel (!%p19_p2) target bundleno = 6 (0x6), region = 93 }
 0x374   :  { %497 = vsyncpa [#allocation3], 1 }
 0x375   :  { %499 = vsyncpa [#allocation3 + $0x1], 1 }
 0x376   :  { %500 = vsyncpa [#allocation6], 1 }
 0x377   :  { %501 = vsyncpa [#allocation4], 1 }
 0x378   :  { %503 = vsyncpa [#allocation4 + $0x1], 1 }

</bundles_post_ra>
